<compile_context>
chip_gen: v7x
topology: tpu7x:2x2x1
jax: 0.10.0
libtpu: 0.0.40
codegen_flags: <defaults>
</compile_context>

<pallas_src>
import functools
import numpy as np
import jax
import jax.numpy as jnp
from jax.experimental import pallas as pl
from jax.experimental.pallas import tpu as pltpu

# Rows per sequence tile. 128 keeps the toy test single-tile; for production S use
# 256-512 on v5e/v6e (128 MiB VMEM); re-derive for v7x's 64 MiB after weight residency.
SEQ_TILE = 128

# Explicit scoped-VMEM limit: 48 MiB fits every generation (v5e/v6e physical 128 MiB,
# v7x physical 64 MiB) and is enough for production SigLIP weight slabs once they are
# single-buffered.
VMEM_LIMIT_BYTES = 48 * 1024 * 1024

NEG_INF = -1e30  # finite large-negative: avoids -inf - -inf = nan in the rescale path


def _compiler_params(dimension_semantics):
    return pltpu.CompilerParams(dimension_semantics=dimension_semantics,
                                vmem_limit_bytes=VMEM_LIMIT_BYTES)


# ---- probe single-buffering support for grid-invariant weights (pl.Buffered(1)) ----
def _probe_kernel(x_ref, o_ref):
    o_ref[...] = x_ref[...] * 2.0


def _probe_single_buffering():
    try:
        spec = pl.BlockSpec((8, 128), lambda i: (0, 0), pipeline_mode=pl.Buffered(1))
        fn = pl.pallas_call(
            _probe_kernel,
            out_shape=jax.ShapeDtypeStruct((8, 128), jnp.float32),
            grid=(2,),
            in_specs=[spec],
            out_specs=pl.BlockSpec((8, 128), lambda i: (0, 0)),
        )
        jax.block_until_ready(fn(jnp.ones((8, 128), jnp.float32)))
        return pl.Buffered(1)
    except Exception:
        return None  # fall back to default double-buffering (correct, just more VMEM)


WEIGHT_PIPELINE_MODE = _probe_single_buffering()


def _wspec(block_shape, index_map):
    """BlockSpec for a grid-invariant weight: single-buffered when supported."""
    if WEIGHT_PIPELINE_MODE is None:
        return pl.BlockSpec(block_shape, index_map)
    return pl.BlockSpec(block_shape, index_map, pipeline_mode=WEIGHT_PIPELINE_MODE)


def _layernorm(x, g, b, eps):
    # Single-pass LN: var = E[x^2] - mu^2 (one data traversal, fewer XLU reductions).
    mu = jnp.mean(x, axis=-1, keepdims=True)
    ms = jnp.mean(x * x, axis=-1, keepdims=True)
    var = ms - mu * mu
    return (x - mu) * jax.lax.rsqrt(var + eps) * g + b


def head_pad_for(head_dim):
    # Lane-dense padded per-head width (multiple of 128) with >=1 spare column for the
    # softmax-denominator "ones in V" trick.
    return max(128, ((head_dim + 1 + 127) // 128) * 128)


# ---------------- kernel 1: patch embedding (Linear) + positional add ----------------
def _embed_kernel(p_ref, w_ref, b_ref, pos_ref, o_ref):
    y = jnp.dot(p_ref[...], w_ref[...], preferred_element_type=jnp.float32)
    o_ref[...] = (y + b_ref[...] + pos_ref[...].astype(jnp.float32)).astype(o_ref.dtype)


def patch_embed(patches, w, b, pos):
    S, Pd = patches.shape
    D = w.shape[1]
    nt = S // SEQ_TILE
    return pl.pallas_call(
        _embed_kernel,
        out_shape=jax.ShapeDtypeStruct((S, D), jnp.bfloat16),
        grid_spec=pltpu.PrefetchScalarGridSpec(
            num_scalar_prefetch=0,
            grid=(nt,),
            in_specs=[
                pl.BlockSpec((SEQ_TILE, Pd), lambda i: (i, 0)),
                _wspec((Pd, D), lambda i: (0, 0)),       # resident, single-buffered
                _wspec((1, D), lambda i: (0, 0)),
                pl.BlockSpec((SEQ_TILE, D), lambda i: (i, 0)),  # bf16 stream
            ],
            out_specs=pl.BlockSpec((SEQ_TILE, D), lambda i: (i, 0)),
        ),
        compiler_params=_compiler_params(("parallel",)),
    )(patches, w, b, pos)


# --------- kernel 2: LN1 + fused head-padded QKV projection (one matmul) ----------
def _ln1_qkv_kernel(x_ref, g_ref, b_ref, wqkv_ref, bqkv_ref,
                    q_ref, k_ref, v_ref, *, num_heads, head_pad, eps):
    x = x_ref[...].astype(jnp.float32)
    h = _layernorm(x, g_ref[...], b_ref[...], eps).astype(jnp.bfloat16)
    # One full-width MXU pass over h; 1/sqrt(head_dim) is folded into the Q columns and
    # the V head-padding carries a ones column (softmax denominator) via its bias.
    y = jnp.dot(h, wqkv_ref[...], preferred_element_type=jnp.float32) + bqkv_ref[...]
    HP = head_pad
    for hh in range(num_heads):                       # 128-lane-aligned static slices
        q_ref[hh] = y[:, hh * HP:(hh + 1) * HP].astype(jnp.bfloat16)
    koff = num_heads * HP
    for hh in range(num_heads):
        k_ref[hh] = y[:, koff + hh * HP:koff + (hh + 1) * HP].astype(jnp.bfloat16)
    voff = 2 * num_heads * HP
    for hh in range(num_heads):
        v_ref[hh] = y[:, voff + hh * HP:voff + (hh + 1) * HP].astype(jnp.bfloat16)


def ln1_qkv(x, lp, *, num_heads, head_pad, eps):
    S, D = x.shape
    three = 3 * num_heads * head_pad
    nt = S // SEQ_TILE
    kern = functools.partial(_ln1_qkv_kernel, num_heads=num_heads,
                             head_pad=head_pad, eps=eps)
    qkv_shape = jax.ShapeDtypeStruct((num_heads, S, head_pad), jnp.bfloat16)
    out_spec = pl.BlockSpec((num_heads, SEQ_TILE, head_pad), lambda i: (0, i, 0))
    return pl.pallas_call(
        kern,
        out_shape=(qkv_shape, qkv_shape, qkv_shape),
        grid_spec=pltpu.PrefetchScalarGridSpec(
            num_scalar_prefetch=0,
            grid=(nt,),
            in_specs=[
                pl.BlockSpec((SEQ_TILE, D), lambda i: (i, 0)),
                _wspec((1, D), lambda i: (0, 0)),          # ln1 gamma
                _wspec((1, D), lambda i: (0, 0)),          # ln1 beta
                _wspec((D, three), lambda i: (0, 0)),      # fused, head-padded Wqkv
                _wspec((1, three), lambda i: (0, 0)),      # fused bias (+ ones col for V)
            ],
            out_specs=(out_spec, out_spec, out_spec),
        ),
        compiler_params=_compiler_params(("parallel",)),
    )(x, lp["ln1_g"], lp["ln1_b"], lp["wqkv"], lp["bqkv"])


# ------ kernel 3: doc-masked flash attention, block-sparse KV, grid over heads ------
def _attn_kernel(kvs_ref, kvc_ref,                       # scalar prefetch (SMEM)
                 docq_ref, dock_ref, q_ref, k_ref, v_ref,
                 o_ref, m_ref, acc_ref, *, head_dim):
    qi = pl.program_id(1)
    ki = pl.program_id(2)

    @pl.when(ki == 0)
    def _init():
        m_ref[...] = jnp.full(m_ref.shape, NEG_INF, jnp.float32)
        acc_ref[...] = jnp.zeros(acc_ref.shape, jnp.float32)

    # Only the KV blocks whose document range overlaps this Q tile are visited; blocks
    # beyond kv_count are gated off (and their index_map is clamped, so no extra DMA).
    @pl.when(ki < kvc_ref[qi])
    def _compute():
        q = q_ref[0]
        k = k_ref[0]
        v = v_ref[0]
        valid = docq_ref[...] == dock_ref[...]           # [Tq,1]==[1,Tk] -> [Tq,Tk]
        s = jax.lax.dot_general(q, k, (((1,), (1,)), ((), ())),
                                preferred_element_type=jnp.float32)
        s = jnp.where(valid, s, NEG_INF)
        m_prev = m_ref[...]
        m_new = jnp.maximum(m_prev, jnp.max(s, axis=-1, keepdims=True))
        alpha = jnp.exp(m_prev - m_new)
        # Multiplicative mask on p: fully-masked rows contribute exactly 0 (no p=1
        # transient); l is picked up by the ones column carried in V's head padding,
        # so no per-block lane-sum is needed.
        p = jnp.exp(s - m_new) * valid.astype(jnp.float32)
        acc_ref[...] = alpha * acc_ref[...] + jnp.dot(
            p.astype(jnp.bfloat16), v, preferred_element_type=jnp.float32)
        m_ref[...] = m_new

    @pl.when(ki == pl.num_programs(2) - 1)
    def _finalize():
        acc = acc_ref[...]
        # V's ones column means acc[:, head_dim] == softmax denominator (always > 0:
        # every token attends at least to itself).
        l = acc[:, head_dim:head_dim + 1]
        o_ref[0] = (acc * (1.0 / l)).astype(o_ref.dtype)


def doc_flash_attention(q, k, v, doc_row, doc_col, kv_start, kv_count, nkv_max,
                        *, num_heads, head_pad, head_dim):
    S = doc_row.shape[0]
    nt = S // SEQ_TILE
    kern = functools.partial(_attn_kernel, head_dim=head_dim)

    # index_maps receive (grid indices..., *scalar-prefetch refs)
    qmap = lambda h, qi, ki, kvs, kvc: (h, qi, 0)
    rowmap = lambda h, qi, ki, kvs, kvc: (qi, 0)

    def kvmap(h, qi, ki, kvs, kvc):
        kb = kvs[qi] + jnp.minimum(ki, kvc[qi] - 1)      # clamp: skipped steps re-use
        return (h, kb, 0)                                # the previous block (no DMA)

    def colmap(h, qi, ki, kvs, kvc):
        kb = kvs[qi] + jnp.minimum(ki, kvc[qi] - 1)
        return (0, kb)

    return pl.pallas_call(
        kern,
        out_shape=jax.ShapeDtypeStruct((num_heads, S, head_pad), jnp.bfloat16),
        grid_spec=pltpu.PrefetchScalarGridSpec(
            num_scalar_prefetch=2,
            grid=(num_heads, nt, nkv_max),
            in_specs=[
                pl.BlockSpec((SEQ_TILE, 1), rowmap),                 # doc ids (rows)
                pl.BlockSpec((1, SEQ_TILE), colmap),                 # doc ids (cols)
                pl.BlockSpec((1, SEQ_TILE, head_pad), qmap),         # q (pre-scaled)
                pl.BlockSpec((1, SEQ_TILE, head_pad), kvmap),        # k
                pl.BlockSpec((1, SEQ_TILE, head_pad), kvmap),        # v (+ ones column)
            ],
            out_specs=pl.BlockSpec((1, SEQ_TILE, head_pad), qmap),
            scratch_shapes=[
                pltpu.VMEM((SEQ_TILE, 1), jnp.float32),              # running max
                pltpu.VMEM((SEQ_TILE, head_pad), jnp.float32),       # output acc (+ l)
            ],
        ),
        compiler_params=_compiler_params(("parallel", "parallel", "arbitrary")),
    )(kv_start, kv_count, doc_row, doc_col, q, k, v)


# -- kernel 4: per-head out-proj + residual + LN2 + MLP + residual (grid over Q tiles) --
def _proj_mlp_kernel(x_ref, attn_ref, wo_ref, bo_ref, g2_ref, bt2_ref,
                     w1_ref, b1_ref, w2_ref, b2_ref, o_ref, *, num_heads, eps):
    h1 = x_ref[...].astype(jnp.float32) + bo_ref[...]
    # Per-head accumulation keeps N = D full MXU lanes and avoids lane-concat relayouts;
    # padding rows of wo are zero so the padded (and ones) columns contribute nothing.
    for hh in range(num_heads):
        h1 = h1 + jnp.dot(attn_ref[hh], wo_ref[hh], preferred_element_type=jnp.float32)
    h2 = _layernorm(h1, g2_ref[...], bt2_ref[...], eps)
    z = jnp.dot(h2.astype(jnp.bfloat16), w1_ref[...],
                preferred_element_type=jnp.float32) + b1_ref[...]
    z = jax.nn.gelu(z, approximate=True)                 # == nn.GELU(approximate='tanh')
    z = jnp.dot(z.astype(jnp.bfloat16), w2_ref[...],
                preferred_element_type=jnp.float32) + b2_ref[...]
    # TODO(synk): attention dropout (cfg attention_dropout) is a training-only path;
    # this kernel implements the inference-mode forward.
    o_ref[...] = (h1 + z).astype(o_ref.dtype)


def out_proj_mlp(x, attn, lp, *, num_heads, head_pad, eps):
    S, D = x.shape
    I = lp["w1"].shape[1]
    nt = S // SEQ_TILE
    kern = functools.partial(_proj_mlp_kernel, num_heads=num_heads, eps=eps)
    row = lambda i: (i, 0)
    rep2 = lambda i: (0, 0)
    rep3 = lambda i: (0, 0, 0)
    # TODO(synk): for production sizes on v7x, add an I-tile grid axis for w1/w2 to cut
    # the resident MLP-weight slab further; single-buffered slabs already fit <48 MiB.
    return pl.pallas_call(
        kern,
        out_shape=jax.ShapeDtypeStruct((S, D), jnp.bfloat16),
        grid_spec=pltpu.PrefetchScalarGridSpec(
            num_scalar_prefetch=0,
            grid=(nt,),
            in_specs=[
                pl.BlockSpec((SEQ_TILE, D), row),                              # residual
                pl.BlockSpec((num_heads, SEQ_TILE, head_pad), lambda i: (0, i, 0)),
                _wspec((num_heads, head_pad, D), rep3),                        # wo (padded)
                _wspec((1, D), rep2),                                          # bo
                _wspec((1, D), rep2), _wspec((1, D), rep2),                    # ln2 g/b
                _wspec((D, I), rep2), _wspec((1, I), rep2),                    # fc1
                _wspec((I, D), rep2), _wspec((1, D), rep2),                    # fc2
            ],
            out_specs=pl.BlockSpec((SEQ_TILE, D), row),
        ),
        compiler_params=_compiler_params(("parallel",)),
    )(x, attn, lp["wo_p"], lp["bo"], lp["ln2_g"], lp["ln2_b"],
      lp["w1"], lp["b1"], lp["w2"], lp["b2"])


# ---------------- kernel 5: post LayerNorm ----------------
def _post_ln_kernel(x_ref, g_ref, b_ref, o_ref, *, eps):
    o_ref[...] = _layernorm(x_ref[...].astype(jnp.float32), g_ref[...], b_ref[...], eps)


def post_layernorm(x, g, b, eps):
    S, D = x.shape
    nt = S // SEQ_TILE
    return pl.pallas_call(
        functools.partial(_post_ln_kernel, eps=eps),
        out_shape=jax.ShapeDtypeStruct((S, D), jnp.float32),
        grid_spec=pltpu.PrefetchScalarGridSpec(
            num_scalar_prefetch=0,
            grid=(nt,),
            in_specs=[pl.BlockSpec((SEQ_TILE, D), lambda i: (i, 0)),
                      _wspec((1, D), lambda i: (0, 0)),
                      _wspec((1, D), lambda i: (0, 0))],
            out_specs=pl.BlockSpec((SEQ_TILE, D), lambda i: (i, 0)),
        ),
        compiler_params=_compiler_params(("parallel",)),
    )(x, g, b)


# ---------------- parameter packing (head-padded, fused, scale-folded) ----------------
def pack_qkv_padded(wq, bq, wk, bk, wv, bv, H, hd, HP, scale):
    D = wq.shape[0]

    def pad(wmat, bvec):
        wmat = np.asarray(wmat, np.float32)
        bvec = np.asarray(bvec, np.float32)
        wp = np.zeros((D, H * HP), np.float32)
        bp = np.zeros((H * HP,), np.float32)
        for h in range(H):
            wp[:, h * HP:h * HP + hd] = wmat[:, h * hd:(h + 1) * hd]
            bp[h * HP:h * HP + hd] = bvec[h * hd:(h + 1) * hd]
        return wp, bp

    wq_p, bq_p = pad(np.asarray(wq) * scale, np.asarray(bq) * scale)  # fold 1/sqrt(hd)
    wk_p, bk_p = pad(wk, bk)
    wv_p, bv_p = pad(wv, bv)
    for h in range(H):
        bv_p[h * HP + hd] = 1.0   # ones column in V's padding -> softmax denominator
    wqkv = jnp.asarray(np.concatenate([wq_p, wk_p, wv_p], axis=1)).astype(jnp.bfloat16)
    bqkv = jnp.asarray(np.concatenate([bq_p, bk_p, bv_p])[None, :])
    return wqkv, bqkv


def pack_out_proj_padded(wo, H, hd, HP):
    wo = np.asarray(wo, np.float32)
    D = wo.shape[1]
    wo_p = np.zeros((H, HP, D), np.float32)
    for h in range(H):
        wo_p[h, :hd, :] = wo[h * hd:(h + 1) * hd, :]
    return jnp.asarray(wo_p).astype(jnp.bfloat16)


def init_params(key, cfg):
    D = cfg["hidden_size"]
    I = cfg["intermediate_size"]
    H = cfg["num_attention_heads"]
    hd = D // H
    HP = head_pad_for(hd)
    Pd = cfg["num_channels"] * cfg["patch_size"] ** 2
    Np = cfg["num_patches"]
    scale = float(hd) ** -0.5

    counter = [0]

    def nk():
        counter[0] += 1
        return jax.random.fold_in(key, counter[0])

    def w(shape, s=0.02):
        return s * jax.random.normal(nk(), shape, jnp.float32)

    params = {
        "patch_w": w((Pd, D)).astype(jnp.bfloat16),
        "patch_b": w((1, D), 0.01),
        "pos_emb": w((Np, D)),
        "post_g": jnp.ones((1, D), jnp.float32),
        "post_b": jnp.zeros((1, D), jnp.float32),
        "layers": [],
    }
    for _ in range(cfg["num_hidden_layers"]):
        wq, wk, wv = w((D, D)), w((D, D)), w((D, D))
        bq, bk, bv = w((D,), 0.01), w((D,), 0.01), w((D,), 0.01)
        wo, bo = w((D, D)), w((D,), 0.01)
        wqkv, bqkv = pack_qkv_padded(wq, bq, wk, bk, wv, bv, H, hd, HP, scale)
        lp = {
            "ln1_g": jnp.ones((1, D), jnp.float32), "ln1_b": jnp.zeros((1, D), jnp.float32),
            "ln2_g": jnp.ones((1, D), jnp.float32), "ln2_b": jnp.zeros((1, D), jnp.float32),
            "wqkv": wqkv, "bqkv": bqkv,
            "wo_p": pack_out_proj_padded(wo, H, hd, HP), "bo": bo.reshape(1, D),
            "w1": w((D, I)).astype(jnp.bfloat16), "b1": w((1, I), 0.01),
            "w2": w((I, D)).astype(jnp.bfloat16), "b2": w((1, D), 0.01),
        }
        params["layers"].append(lp)
    return params


# ---------------- host-side glue ----------------
def build_pos_embeds(pos_emb, token_grids, D, grid_side):
    # position_embedding.weight -> (side, side, D); per image bilinear+antialias resize
    # to (h, w), then flatten row-major to (h*w, D) — matches torch interpolate+reshape.
    # TODO(synk): jax.image.resize(linear, antialias=True) is not bit-identical to torch
    # F.interpolate(bilinear, antialias=True) in every resampling regime.
    pe = pos_emb.reshape(grid_side, grid_side, D)
    parts = []
    for (h, w) in token_grids:
        h, w = int(h), int(w)
        r = jax.image.resize(pe, (h, w, D), method="linear", antialias=True)
        parts.append(r.reshape(h * w, D))
    return jnp.concatenate(parts, axis=0)


def build_doc_tensors(seq_sizes, s_pad, tile):
    # Mirrors create_document_ids: real tokens get their image index, padded tokens get
    # unique ids so they only attend to themselves. Because packed documents are
    # contiguous, the set of KV tiles overlapping each Q tile is a contiguous range
    # [kv_start, kv_start+kv_count) — used to make the KV grid axis block-sparse.
    doc = np.repeat(np.arange(len(seq_sizes)), seq_sizes).astype(np.int32)
    s = doc.shape[0]
    doc = np.concatenate([doc, np.arange(s, s_pad, dtype=np.int32)])
    nt = s_pad // tile
    tiles = doc.reshape(nt, tile)
    tmin, tmax = tiles.min(axis=1), tiles.max(axis=1)
    kv_start = np.zeros((nt,), np.int32)
    kv_count = np.zeros((nt,), np.int32)
    for qi in range(nt):
        ov = np.nonzero((tmin <= tmax[qi]) & (tmax >= tmin[qi]))[0]
        kv_start[qi] = ov.min()
        kv_count[qi] = ov.max() - ov.min() + 1
    nkv_max = int(kv_count.max())
    return (jnp.asarray(doc.reshape(s_pad, 1)),
            jnp.asarray(doc.reshape(1, s_pad)),
            jnp.asarray(kv_start), jnp.asarray(kv_count), nkv_max)


def pad_rows(a, s_pad):
    s = a.shape[0]
    if s == s_pad:
        return a
    return jnp.concatenate([a, jnp.zeros((s_pad - s,) + a.shape[1:], a.dtype)], axis=0)


def siglip2_forward(params, seq_patches, token_grids, cfg):
    D = cfg["hidden_size"]
    H = cfg["num_attention_heads"]
    hd = D // H
    HP = head_pad_for(hd)
    eps = cfg["layer_norm_eps"]
    grid_side = int(cfg["num_patches"] ** 0.5)

    seq_sizes = [int(h) * int(w) for (h, w) in token_grids]  # torch.prod(token_grids,-1)
    S = int(sum(seq_sizes))
    s_pad = ((S + SEQ_TILE - 1) // SEQ_TILE) * SEQ_TILE

    pos = pad_rows(build_pos_embeds(params["pos_emb"], token_grids, D, grid_side)
                   .astype(jnp.bfloat16), s_pad)
    patches = pad_rows(seq_patches.astype(jnp.bfloat16), s_pad)
    doc_row, doc_col, kv_start, kv_count, nkv_max = build_doc_tensors(
        seq_sizes, s_pad, SEQ_TILE)

    x = patch_embed(patches, params["patch_w"], params["patch_b"], pos)

    # TODO(synk): per-layer weights could be stacked into [L, ...] arrays and streamed
    # via a layer grid axis in a single pallas_call; kept as a per-layer loop here.
    for lp in params["layers"]:
        q, k, v = ln1_qkv(x, lp, num_heads=H, head_pad=HP, eps=eps)
        attn = doc_flash_attention(q, k, v, doc_row, doc_col, kv_start, kv_count,
                                   nkv_max, num_heads=H, head_pad=HP, head_dim=hd)
        x = out_proj_mlp(x, attn, lp, num_heads=H, head_pad=HP, eps=eps)

    out = post_layernorm(x, params["post_g"], params["post_b"], eps)
    return out[:S]                                             # drop padded rows; [S, D]


if __name__ == "__main__":
    cfg = dict(hidden_size=32, intermediate_size=64, num_hidden_layers=2,
               num_attention_heads=4, num_channels=3, patch_size=4,
               layer_norm_eps=1e-6, attention_dropout=0.1, num_patches=16)

    key = jax.random.PRNGKey(0)
    k_params, k_input = jax.random.split(key)

    params = init_params(k_params, cfg)

    # Two packed images with token grids (2,4) and (2,4) -> seq_sizes [8, 8], S = 16
    token_grids = np.array([[2, 4], [2, 4]], dtype=np.int32)
    S = int(np.prod(token_grids, axis=-1).sum())
    patch_dim = cfg["num_channels"] * cfg["patch_size"] ** 2
    seq_patches = jax.random.normal(k_input, (S, patch_dim), jnp.float32)

    out = siglip2_forward(params, seq_patches, token_grids, cfg)
    out = jax.block_until_ready(out)

    assert out.shape == (S, cfg["hidden_size"])
    assert bool(jnp.all(jnp.isfinite(out)))
    print("KERNEL_OK")
</pallas_src>

<mosaic_0001>
module attributes {stable_mosaic.version = 11 : i64} {
  func.func @_probe_kernel(%arg0: i32, %arg1: memref<8x128xf32, #tpu.memory_space<vmem>>, %arg2: memref<8x128xf32, #tpu.memory_space<vmem>>) attributes {dimension_semantics = [#tpu.dimension_semantics<arbitrary>], iteration_bounds = array<i64: 2>, scalar_prefetch = 0 : i64, scratch_operands = 0 : i64, tpu.core_type = #tpu.core_type<tc>, window_params = [{pipeline_mode = #tpu.pipeline_mode<synchronous>, transform_indices = @transform_0, window_bounds = array<i64: 8, 128>}, {pipeline_mode = #tpu.pipeline_mode<synchronous>, transform_indices = @transform_1, window_bounds = array<i64: 8, 128>}]} {
    %c0 = arith.constant 0 : index
    %c0_0 = arith.constant 0 : index
    %0 = vector.load %arg1[%c0, %c0_0] : memref<8x128xf32, #tpu.memory_space<vmem>>, vector<8x128xf32>
    %cst = arith.constant 2.000000e+00 : f32
    %1 = vector.broadcast %cst : f32 to vector<8x128xf32>
    %2 = arith.mulf %0, %1 : vector<8x128xf32>
    %c0_1 = arith.constant 0 : index
    %c0_2 = arith.constant 0 : index
    %3 = vector.load %arg2[%c0_1, %c0_2] : memref<8x128xf32, #tpu.memory_space<vmem>>, vector<8x128xf32>
    tpu.vector_store %arg2[%c0_1, %c0_2], %2 {strides = array<i32>} : memref<8x128xf32, #tpu.memory_space<vmem>>, vector<8x128xf32>,
    return
  }
  func.func @transform_0(%arg0: i32) -> (i32, i32) {
    %c0_i32 = arith.constant 0 : i32
    %c0_i32_0 = arith.constant 0 : i32
    %c0_i32_1 = arith.constant 0 : i32
    return %c0_i32, %c0_i32_0 : i32, i32
  }
  func.func @transform_1(%arg0: i32) -> (i32, i32) {
    %c0_i32 = arith.constant 0 : i32
    %c0_i32_0 = arith.constant 0 : i32
    %c0_i32_1 = arith.constant 0 : i32
    return %c0_i32, %c0_i32_0 : i32, i32
  }
}

module attributes {stable_mosaic.version = 11 : i64} {
  func.func @_embed_kernel(%arg0: i32, %arg1: memref<128x48xbf16, #tpu.memory_space<vmem>>, %arg2: memref<48x32xbf16, #tpu.memory_space<vmem>>, %arg3: memref<1x32xf32, #tpu.memory_space<vmem>>, %arg4: memref<128x32xbf16, #tpu.memory_space<vmem>>, %arg5: memref<128x32xbf16, #tpu.memory_space<vmem>>) attributes {dimension_semantics = [#tpu.dimension_semantics<parallel>], iteration_bounds = array<i64: 1>, scalar_prefetch = 0 : i64, scratch_operands = 0 : i64, tpu.core_type = #tpu.core_type<tc>, window_params = [{transform_indices = @transform_0, window_bounds = array<i64: 128, 48>}, {pipeline_mode = #tpu.pipeline_mode<synchronous>, transform_indices = @transform_1, window_bounds = array<i64: 48, 32>}, {pipeline_mode = #tpu.pipeline_mode<synchronous>, transform_indices = @transform_2, window_bounds = array<i64: 1, 32>}, {transform_indices = @transform_3, window_bounds = array<i64: 128, 32>}, {transform_indices = @transform_4, window_bounds = array<i64: 128, 32>}]} {
    %c0 = arith.constant 0 : index
    %c0_0 = arith.constant 0 : index
    %0 = vector.load %arg1[%c0, %c0_0] : memref<128x48xbf16, #tpu.memory_space<vmem>>, vector<128x48xbf16>
    %c0_1 = arith.constant 0 : index
    %c0_2 = arith.constant 0 : index
    %1 = vector.load %arg2[%c0_1, %c0_2] : memref<48x32xbf16, #tpu.memory_space<vmem>>, vector<48x32xbf16>
    %cst = arith.constant dense<0.000000e+00> : vector<128x32xf32>
    %2 = tpu.matmul %0, %1, %cst {dimension_numbers = #tpu.dot_dimension_numbers<[1], [0], [0], [1], [0, 0, 1, 1], [], []>} : vector<128x48xbf16>, vector<48x32xbf16>, vector<128x32xf32> -> vector<128x32xf32>
    %c0_3 = arith.constant 0 : index
    %c0_4 = arith.constant 0 : index
    %3 = vector.load %arg3[%c0_3, %c0_4] : memref<1x32xf32, #tpu.memory_space<vmem>>, vector<1x32xf32>
    %4 = vector.broadcast %3 : vector<1x32xf32> to vector<128x32xf32>
    %5 = arith.addf %2, %4 : vector<128x32xf32>
    %c0_5 = arith.constant 0 : index
    %c0_6 = arith.constant 0 : index
    %6 = vector.load %arg4[%c0_5, %c0_6] : memref<128x32xbf16, #tpu.memory_space<vmem>>, vector<128x32xbf16>
    %7 = arith.extf %6 : vector<128x32xbf16> to vector<128x32xf32>
    %8 = arith.addf %5, %7 : vector<128x32xf32>
    %9 = arith.truncf %8 : vector<128x32xf32> to vector<128x32xbf16>
    %c0_7 = arith.constant 0 : index
    %c0_8 = arith.constant 0 : index
    %10 = vector.load %arg5[%c0_7, %c0_8] : memref<128x32xbf16, #tpu.memory_space<vmem>>, vector<128x32xbf16>
    tpu.vector_store %arg5[%c0_7, %c0_8], %9 {strides = array<i32>} : memref<128x32xbf16, #tpu.memory_space<vmem>>, vector<128x32xbf16>,
    return
  }
  func.func @transform_0(%arg0: i32) -> (i32, i32) {
    %c0_i32 = arith.constant 0 : i32
    %c0_i32_0 = arith.constant 0 : i32
    return %arg0, %c0_i32 : i32, i32
  }
  func.func @transform_1(%arg0: i32) -> (i32, i32) {
    %c0_i32 = arith.constant 0 : i32
    %c0_i32_0 = arith.constant 0 : i32
    %c0_i32_1 = arith.constant 0 : i32
    return %c0_i32, %c0_i32_0 : i32, i32
  }
  func.func @transform_2(%arg0: i32) -> (i32, i32) {
    %c0_i32 = arith.constant 0 : i32
    %c0_i32_0 = arith.constant 0 : i32
    %c0_i32_1 = arith.constant 0 : i32
    return %c0_i32, %c0_i32_0 : i32, i32
  }
  func.func @transform_3(%arg0: i32) -> (i32, i32) {
    %c0_i32 = arith.constant 0 : i32
    %c0_i32_0 = arith.constant 0 : i32
    return %arg0, %c0_i32 : i32, i32
  }
  func.func @transform_4(%arg0: i32) -> (i32, i32) {
    %c0_i32 = arith.constant 0 : i32
    %c0_i32_0 = arith.constant 0 : i32
    return %arg0, %c0_i32 : i32, i32
  }
}

</mosaic_0001>

<bundles_post_ra>
// kernel: tpu_custom_call.1
= control target key start
LH: loop header
LB: loop body
LE: loop exit
PB: predicated region body
PF: predicated region fallthrough
CT: control target
= control target key end

     0   :  { %6 = vsyncpa [#allocation3], 0  ;;  %s341_s0 = inlined_call_operand.hbm [shape: f32[8,128], index: 0, kind: input, shape index: {}]   ;;  %s342_s1 = inlined_call_operand.hbm [shape: f32[8,128], index: 1, kind: output, shape index: {}]  }
   0x1   :  { %7 = vsyncpa [#allocation4], 0  ;;  %s262_s6 = smov 0  }
   0x2 LB: > { %s145_s7 = sadd.s32 4294967295, %s248_s6   ;;  %p146_p0 = scmp.ge.s32.totalorder %s248_s6, 1  ;;  %s248_s6 = sphi %s262_s6, %s13_s6  }
   0x3   : > { %p60_p1 = scmp.lt.s32.totalorder %s248_s6, 3  ;;  %p276_p3 = scmp.eq.s32.totalorder %s145_s7, 0 }
   0x4   : > { %s250_s10 = smov [#allocation2]   ;;  %s180_s15 = scalar_lea.hbm %s341_s0, 128 }
   0x5   : > { %p270_p2 = pnand %p146_p0, %p60_p1  ;;  %s73_s11 = sshll.u32 %s250_s10, 4  ;;  %s74_s11 = int_to_ptr.vmem [resolvable:$true] %s73_s11 }
   0x6   : > { %s347_s9 = scalar_select %p276_p3, 1, 0 }
   0x7   : > { %s346_s8 = scalar_select %p270_p2, 1, 0 }
   0x8   : > { %p162_p4 = pneg %p270_p2  ;;  %p181_p6 = scmp.ne.s32.totalorder %s341_s0, %s180_s15 }
   0x9   : > { %p187_p10 = scmp.lt.u32.totalorder %s180_s15, %s341_s0 }
   0xa   : > { %p284_p5 = pnand %p276_p3, %p162_p4 }
   0xc   : > { %p182_p7 = pneg %p284_p5 }
   0xe   : > { %p183_p8 = pnand %p182_p7, %p181_p6 }
  0x10   : > { %p184_p9 = pneg %p183_p8 }
  0x12   : > { %p189_p11 = pnand %p187_p10, %p184_p9 }
  0x14   : > { %192 = shalt.err (!%p189_p11)
}
  0x15   : > { %s193_s20 = scalar_lea.vmem %s74_s11, 128  ;;  %p201_p1 = scmp.lt.s32.totalorder %s74_s11, %s74_s11 }
  0x16   : > { %p194_p12 = scmp.ne.s32.totalorder %s74_s11, %s193_s20  ;;  %p202_p4 = scmp.lt.s32.totalorder %s193_s20, %s193_s20 }
  0x18   : > { %p196_p13 = pnand %p194_p12, %p182_p7  ;;  %p203_p3 = por %p202_p4, %p201_p1 }
  0x1a   : > { %p197_p0 = pneg %p196_p13 }
  0x1c   : > { %p204_p2 = pnand %p203_p3, %p197_p0 }
  0x1e   : > { %207 = shalt.err (!%p204_p2)
}
  0x1f   : > { %165 = dma.hbm_to_vmem [thread:$0]  (!%p284_p5), %s341_s0, 128, %s74_s11, [#allocation3]  }
  0x20   : > { %p349_p6 = scmp.ne.s32.totalorder %s346_s8, 0 }
  0x21   : > { %p350_p8 = scmp.ne.s32.totalorder (!%p349_p6), %s347_s9, 0 }
  0x22   : > { %86 = sbr.rel (%p349_p6) target bundleno = 67 (0x43), region = 24 }
  0x29   : > { %239 = dma.done.wait (%p350_p8), [#allocation3], 128  }
  0x2a   : > { %241 = vsyncadd (%p350_p8), [#allocation3], 4294967168  ;;  %s251_s23 = smov [#allocation5]   ;;  %v96_v0 = vld [vmem:[#allocation2] sm:$0xff]  ;;  %p312_p2 = scmp.eq.s32.totalorder %s145_s7, 1 }
  0x2b   : > { %s106_s24 = sshll.u32 %s251_s23, 4  ;;  %v97_v1 = vmul.f32 2.0, %v96_v0  ;;  %s107_s24 = int_to_ptr.vmem [resolvable:$true] %s106_s24 }
  0x2c   : > { %s208_s26 = scalar_lea.vmem %s107_s24, 128  ;;  %p215_p9 = scmp.lt.s32.totalorder %s107_s24, %s107_s24 }
  0x2d   : > { %98 = vst [vmem:[#allocation5] sm:$0xff] %v97_v1  ;;  %p209_p3 = scmp.ne.s32.totalorder %s107_s24, %s208_s26  ;;  %p216_p10 = scmp.lt.s32.totalorder %s208_s26, %s208_s26 }
  0x2f   : > { %p210_p5 = pnand %p209_p3, %p312_p2  ;;  %p217_p11 = por %p216_p10, %p215_p9 }
  0x31   : > { %p211_p7 = pneg %p210_p5 }
  0x33   : > { %p218_p12 = pnand %p217_p11, %p211_p7 }
  0x35   : > { %221 = shalt.err (!%p218_p12)
}
  0x36   : > { %s222_s29 = scalar_lea.hbm %s342_s1, 128 }
  0x37   : > { %p223_p13 = scmp.ne.s32.totalorder %s342_s1, %s222_s29  ;;  %p228_p4 = scmp.lt.u32.totalorder %s222_s29, %s342_s1 }
  0x39   : > { %p224_p0 = pnand %p223_p13, %p312_p2 }
  0x3b   : > { %p225_p1 = pneg %p224_p0 }
  0x3d   : > { %p230_p6 = pnand %p228_p4, %p225_p1 }
  0x3f   : > { %233 = shalt.err (!%p230_p6)
}
  0x40   : > { %159 = dma.vmem_to_hbm [thread:$0]  (%p312_p2), %s107_s24, 128, %s342_s1, [#allocation4]  }
  0x41   : > { %243 = dma.done.wait (%p312_p2), [#allocation4], 128  }
  0x42   : > { %245 = vsyncadd (%p312_p2), [#allocation4], 4294967168 }
  0x43 PF: > { %s13_s6 = sadd.s32 1, %s248_s6  }
  0x44   : > { %p10_p8 = scmp.ge.s32.totalorder %s13_s6, 4  }
  0x46   :  { %12 = sbr.rel (!%p10_p8) target bundleno = 2 (0x2), region = 53 }
  0x4d   :  { %119 = vsyncpa [#allocation3], 1 }
  0x4e   :  { %121 = vsyncpa [#allocation3 + $0x1], 1 }
  0x4f   :  { %122 = vsyncpa [#allocation4], 1 }
  0x50   :  { %124 = vsyncpa [#allocation4 + $0x1], 1 }

// kernel: tpu_custom_call.1
= control target key start
LH: loop header
LB: loop body
LE: loop exit
PB: predicated region body
PF: predicated region fallthrough
CT: control target
= control target key end

     0   :  { %vm105_vm0 = vcmask 392192   ;;  %vm339_vm1 = vcmask 257024   ;;  %s676_s1 = inlined_call_operand.vmem [shape: bf16[48,32], index: 1, kind: input, shape index: {}]   ;;  %s677_s0 = inlined_call_operand.vmem [shape: bf16[128,48], index: 0, kind: input, shape index: {}]   ;;  %s678_s3 = inlined_call_operand.vmem [shape: bf16[128,32], index: 3, kind: input, shape index: {}]   ;;  %s679_s2 = inlined_call_operand.vmem [shape: f32[1,32], index: 2, kind: input, shape index: {}]   ;;  %s680_s4 = inlined_call_operand.vmem [shape: bf16[128,32], index: 4, kind: output, shape index: {}]  }
   0x1   :  { %v490_v0 = vld [vmem:[%s676_s1] sm:$0xff]   ;;  %v491_v1 = vld [vmem:[%s676_s1 + $0x8] sm:$0xff]   ;;  %v492_v2 = vld [vmem:[%s676_s1 + $0x10] sm:$0xff]  }
   0x2   :  { %462 = vmatprep.subr.bf16.mxu0 %v490_v0  ;;  %484 = vmatprep.subr.bf16.mxu1 %v490_v0  ;;  %v493_v3 = vld [vmem:[%s677_s0] sm:$0xff]   ;;  %v495_v5 = vld [vmem:[%s677_s0 + $0x8] sm:$0xff]   ;;  %v497_v7 = vld [vmem:[%s677_s0 + $0x10] sm:$0xff]  }
   0x3   :  { %463 = vmatpush3.bf16.msra.mxu0 %v490_v0  ;;  %487 = vmatpush3.bf16.msra.mxu1 %v490_v0  ;;  %v494_v4 = vld [vmem:[%s677_s0 + $0x20] sm:$0xff]   ;;  %v496_v6 = vld [vmem:[%s677_s0 + $0x28] sm:$0xff]   ;;  %v498_v8 = vld [vmem:[%s677_s0 + $0x30] sm:$0xff]  }
   0x4   :  { %464 = vmatprep.subr.bf16.mxu0 %v491_v1  ;;  %485 = vmatprep.subr.bf16.mxu1 %v491_v1  ;;  %v499_v9 = vld [vmem:[%s677_s0 + $0x18] sm:$0xff]   ;;  %v444_v11 = vld [vmem:[%s678_s3 + $0x8] sm:$0xff]   ;;  %v413_v13 = vld [vmem:[%s678_s3] sm:$0xff]  }
   0x5   :  { %468 = vmatprep.mubr.msk.bf16.mxu0 %vm105_vm0, %v493_v3  ;;  %476 = vmatprep.mubr.msk.bf16.mxu1 %vm105_vm0, %v494_v4  ;;  %v500_v10 = vld [vmem:[%s677_s0 + $0x38] sm:$0xff]   ;;  %v448_v12 = vld [vmem:[%s678_s3 + $0x28] sm:$0xff]   ;;  %v447_v14 = vld [vmem:[%s678_s3 + $0x20] sm:$0xff]   ;;  %v418_v16 = vunpack.c.l.bf16 %v444_v11  ;;  %v414_v20 = vunpack.c.l.bf16 %v413_v13  ;;  %v419_v22 = vunpack.c.h.bf16 %v444_v11  ;;  %v415_v28 = vunpack.c.h.bf16 %v413_v13 }
   0x6   :  { %v582_v15 = vld [vmem:[%s679_s2] ss:$0 sm:$0xff]  ;;  %v434_v17 = vunpack.c.l.bf16 %v448_v12  ;;  %v430_v21 = vunpack.c.l.bf16 %v447_v14  ;;  %v435_v27 = vunpack.c.h.bf16 %v448_v12  ;;  %v431_v33 = vunpack.c.h.bf16 %v447_v14  ;;  %v446_v44 = vld [vmem:[%s678_s3 + $0x18] sm:$0xff]   ;;  %v445_v50 = vld [vmem:[%s678_s3 + $0x10] sm:$0xff]  }
   0x7   :  { %465 = vmatpush3.bf16.msra.mxu0 %v491_v1  ;;  %488 = vmatpush3.bf16.msra.mxu1 %v491_v1  ;;  %v450_v45 = vld [vmem:[%s678_s3 + $0x38] sm:$0xff]   ;;  %v449_v51 = vld [vmem:[%s678_s3 + $0x30] sm:$0xff]   ;;  %v426_v58 = vunpack.c.l.bf16 %v446_v44  ;;  %v422_v0 = vunpack.c.l.bf16 %v445_v50  ;;  %v423_v12 = vunpack.c.h.bf16 %v445_v50 }
   0x8   :  { %466 = vmatprep.subr.bf16.mxu0 %v492_v2  ;;  %486 = vmatprep.subr.bf16.mxu1 %v492_v2  ;;  %v442_v59 = vunpack.c.l.bf16 %v450_v45  ;;  %v438_v1 = vunpack.c.l.bf16 %v449_v51  ;;  %v439_v13 = vunpack.c.h.bf16 %v449_v51 }
   0xb   :  { %467 = vmatpush3.bf16.msra.mxu0 %v492_v2  ;;  %489 = vmatpush3.bf16.msra.mxu1 %v492_v2 }
   0xe   :  { %469 = vmatmul.mubr.msk.bf16.vlgmr.msra.gmra.mrb[0].mxu0 %vm105_vm0, %v495_v5  ;;  %477 = vmatmul.mubr.msk.bf16.vlgmr.msra.gmra.mrb[0].mxu1 %vm105_vm0, %v496_v6  ;;  %v427_v6 = vunpack.c.h.bf16 %v446_v44 }
   0xf   :  { %472 = vmatprep.mubr.msk.bf16.mxu0 %vm105_vm0, %v497_v7  ;;  %480 = vmatprep.mubr.msk.bf16.mxu1 %vm105_vm0, %v498_v8  ;;  %v443_v7 = vunpack.c.h.bf16 %v450_v45 }
  0x16   :  { %473 = vmatmul.mubr.msk.bf16.gmra.mrb[4].mxu0 %vm105_vm0, %v499_v9  ;;  %481 = vmatmul.mubr.msk.bf16.gmra.mrb[4].mxu1 %vm105_vm0, %v500_v10 }
  0xe1   :  { %v470_v18 = vpop.f32.mrb[0].mxu0  ;;  %v478_v19 = vpop.f32.mrb[0].mxu1 }
  0xe2   :  { %v173_v23 = vadd.f32 %v470_v18, %v582_v15  ;;  %v205_v24 = vadd.f32 %v478_v19, %v582_v15  ;;  %v164_v25 = vpop.f32.mrb[1].mxu0  ;;  %v196_v26 = vpop.f32.mrb[1].mxu1 }
  0xe3   :  { %v165_v29 = vadd.f32 %v582_v15, %v164_v25  ;;  %v197_v30 = vadd.f32 %v582_v15, %v196_v26  ;;  %v471_v31 = vpop.f32.mrb[2].mxu0  ;;  %v479_v32 = vpop.f32.mrb[2].mxu1 }
  0xe4   :  { %v261_v34 = vadd.f32 %v418_v16, %v173_v23  ;;  %v269_v35 = vadd.f32 %v434_v17, %v205_v24  ;;  %v176_v36 = vadd.f32 %v471_v31, %v582_v15  ;;  %v208_v37 = vadd.f32 %v479_v32, %v582_v15  ;;  %v167_v38 = vpop.f32.mrb[3].mxu0  ;;  %v199_v39 = vpop.f32.mrb[3].mxu1 }
  0xe5   :  { %v259_v40 = vadd.f32 %v414_v20, %v165_v29  ;;  %v267_v41 = vadd.f32 %v430_v21, %v197_v30  ;;  %v168_v42 = vadd.f32 %v582_v15, %v167_v38  ;;  %v200_v43 = vadd.f32 %v582_v15, %v199_v39 }
  0xe6   :  { %v398_v46 = vpack.c.bf16 %v261_v34, %v261_v34  ;;  %v406_v47 = vpack.c.bf16 %v269_v35, %v269_v35  ;;  %v262_v48 = vadd.f32 %v419_v22, %v176_v36  ;;  %v270_v49 = vadd.f32 %v435_v27, %v208_v37 }
  0xe7   :  { %v396_v52 = vpack.c.bf16 %v259_v40, %v259_v40  ;;  %v404_v53 = vpack.c.bf16 %v267_v41, %v267_v41  ;;  %v260_v54 = vadd.f32 %v415_v28, %v168_v42  ;;  %v268_v55 = vadd.f32 %v431_v33, %v200_v43 }
  0xe8   :  { %342 = vst.msk [vmem:[%s680_s4 + $0x8] sm:$0xf] %vm339_vm1, %v398_v46  ;;  %350 = vst.msk [vmem:[%s680_s4 + $0x28] sm:$0xf] %vm339_vm1, %v406_v47  ;;  %v399_v56 = vpack.c.bf16 %v262_v48, %v262_v48  ;;  %v407_v57 = vpack.c.bf16 %v270_v49, %v270_v49 }
  0xe9   :  { %340 = vst.msk [vmem:[%s680_s4] sm:$0xf] %vm339_vm1, %v396_v52  ;;  %348 = vst.msk [vmem:[%s680_s4 + $0x20] sm:$0xf] %vm339_vm1, %v404_v53  ;;  %v397_v60 = vpack.c.bf16 %v260_v54, %v260_v54  ;;  %v405_v61 = vpack.c.bf16 %v268_v55, %v268_v55  ;;  %v474_v62 = vpop.f32.mrb[4].mxu0  ;;  %v482_v63 = vpop.f32.mrb[4].mxu1 }
  0xea   :  { %343 = vst.msk [vmem:[%s680_s4 + $0xc] sm:$0xf] %vm339_vm1, %v399_v56  ;;  %351 = vst.msk [vmem:[%s680_s4 + $0x2c] sm:$0xf] %vm339_vm1, %v407_v57  ;;  %v189_v2 = vadd.f32 %v474_v62, %v582_v15  ;;  %v221_v3 = vadd.f32 %v482_v63, %v582_v15  ;;  %v180_v4 = vpop.f32.mrb[5].mxu0  ;;  %v212_v5 = vpop.f32.mrb[5].mxu1 }
  0xeb   :  { %341 = vst.msk [vmem:[%s680_s4 + $0x4] sm:$0xf] %vm339_vm1, %v397_v60  ;;  %349 = vst.msk [vmem:[%s680_s4 + $0x24] sm:$0xf] %vm339_vm1, %v405_v61  ;;  %v181_v8 = vadd.f32 %v582_v15, %v180_v4  ;;  %v213_v9 = vadd.f32 %v582_v15, %v212_v5  ;;  %v475_v10 = vpop.f32.mrb[6].mxu0  ;;  %v483_v11 = vpop.f32.mrb[6].mxu1 }
  0xec   :  { %v265_v14 = vadd.f32 %v426_v58, %v189_v2  ;;  %v273_v16 = vadd.f32 %v442_v59, %v221_v3  ;;  %v192_v17 = vadd.f32 %v475_v10, %v582_v15  ;;  %v224_v18 = vadd.f32 %v483_v11, %v582_v15  ;;  %v183_v19 = vpop.f32.mrb[7].mxu0  ;;  %v215_v20 = vpop.f32.mrb[7].mxu1 }
  0xed   :  { %v263_v21 = vadd.f32 %v422_v0, %v181_v8  ;;  %v271_v22 = vadd.f32 %v438_v1, %v213_v9  ;;  %v184_v23 = vadd.f32 %v582_v15, %v183_v19  ;;  %v216_v24 = vadd.f32 %v582_v15, %v215_v20 }
  0xee   :  { %v402_v25 = vpack.c.bf16 %v265_v14, %v265_v14  ;;  %v410_v26 = vpack.c.bf16 %v273_v16, %v273_v16  ;;  %v266_v27 = vadd.f32 %v427_v6, %v192_v17  ;;  %v274_v28 = vadd.f32 %v443_v7, %v224_v18 }
  0xef   :  { %v400_v29 = vpack.c.bf16 %v263_v21, %v263_v21  ;;  %v408_v30 = vpack.c.bf16 %v271_v22, %v271_v22  ;;  %v264_v31 = vadd.f32 %v423_v12, %v184_v23  ;;  %v272_v32 = vadd.f32 %v439_v13, %v216_v24 }
  0xf0   :  { %346 = vst.msk [vmem:[%s680_s4 + $0x18] sm:$0xf] %vm339_vm1, %v402_v25  ;;  %354 = vst.msk [vmem:[%s680_s4 + $0x38] sm:$0xf] %vm339_vm1, %v410_v26  ;;  %v403_v33 = vpack.c.bf16 %v266_v27, %v266_v27  ;;  %v411_v15 = vpack.c.bf16 %v274_v28, %v274_v28 }
  0xf1   :  { %344 = vst.msk [vmem:[%s680_s4 + $0x10] sm:$0xf] %vm339_vm1, %v400_v29  ;;  %352 = vst.msk [vmem:[%s680_s4 + $0x30] sm:$0xf] %vm339_vm1, %v408_v30  ;;  %v401_v34 = vpack.c.bf16 %v264_v31, %v264_v31  ;;  %v409_v35 = vpack.c.bf16 %v272_v32, %v272_v32 }
  0xf2   :  { %347 = vst.msk [vmem:[%s680_s4 + $0x1c] sm:$0xf] %vm339_vm1, %v403_v33  ;;  %355 = vst.msk [vmem:[%s680_s4 + $0x3c] sm:$0xf] %vm339_vm1, %v411_v15 }
  0xf3   :  { %345 = vst.msk [vmem:[%s680_s4 + $0x14] sm:$0xf] %vm339_vm1, %v401_v34  ;;  %353 = vst.msk [vmem:[%s680_s4 + $0x34] sm:$0xf] %vm339_vm1, %v409_v35 }

</bundles_post_ra>
